<compile_context>
chip_gen: v5e
topology: v5e:2x2
jax: 0.10.0
libtpu: 0.0.40
codegen_flags: <defaults>
</compile_context>

<pallas_src>
import jax
import jax.numpy as jnp
from jax.experimental import pallas as pl
from jax.experimental.pallas import tpu as pltpu


def value_function_kernel(xT_ref, w1_ref, b1_ref, w2_ref, b2_ref,
                          wfc_ref, bfc_ref, o_ref):
    # Encoder layer 1: (H, D) @ (D, TB) on the MXU; bias + ReLU on the VPU.
    h = jnp.dot(w1_ref[...], xT_ref[...], preferred_element_type=jnp.float32)
    h = jnp.maximum(h + b1_ref[...], 0.0)
    # Encoder layer 2: (H, H) @ (H, TB).
    h = jnp.dot(w2_ref[...], h, preferred_element_type=jnp.float32)
    h = jnp.maximum(h + b2_ref[...], 0.0)
    # Value head Linear(H, 1): VPU broadcast-multiply + sublane reduction
    # (avoids an N=1 MXU pass; output stays lane-dense (1, TB)).
    v = jnp.sum(h * wfc_ref[...], axis=0, keepdims=True)
    o_ref[...] = v + bfc_ref[0, 0]


def _round_up(n, m):
    return ((n + m - 1) // m) * m


def value_function_forward(x, params, *, tile_b=512):
    """ValueFunction forward.  x: (batch, obs_dim) -> (batch, 1) float32."""
    w1, b1, w2, b2, wfc, bfc = params          # PyTorch layouts: W (out, in)
    batch, obs_dim = x.shape
    hidden = w1.shape[0]
    f32 = jnp.float32

    # Lane-dense padding of the feature axes.
    d_pad = _round_up(obs_dim, 128)
    h_pad = _round_up(hidden, 128)

    # Batch tile: MXU-friendly 512 at scale, full (sublane-aligned) when small.
    tb = tile_b if batch >= tile_b else _round_up(batch, 8)
    b_pad = _round_up(batch, tb)
    num_tiles = b_pad // tb

    # Feature-major ("transposed") operands, zero-padded dense.  Zero padding
    # is exact: padded hidden units get zero weights + zero bias -> relu(0)=0
    # and contribute nothing downstream.
    xT = jnp.zeros((d_pad, b_pad), f32).at[:obs_dim, :batch].set(x.T.astype(f32))
    w1p = jnp.zeros((h_pad, d_pad), f32).at[:hidden, :obs_dim].set(w1)
    b1p = jnp.zeros((h_pad, 1), f32).at[:hidden, 0].set(b1)
    w2p = jnp.zeros((h_pad, h_pad), f32).at[:hidden, :hidden].set(w2)
    b2p = jnp.zeros((h_pad, 1), f32).at[:hidden, 0].set(b2)
    wfcp = jnp.zeros((h_pad, 1), f32).at[:hidden, 0].set(wfc.reshape(-1))
    bfcp = bfc.reshape(1, 1).astype(f32)

    flops = 2 * b_pad * (h_pad * d_pad + h_pad * h_pad + h_pad)
    bytes_accessed = 4 * (d_pad * b_pad            # x tiles
                          + h_pad * d_pad + h_pad * h_pad + 3 * h_pad + 1  # params
                          + b_pad)                 # output

    grid_spec = pltpu.PrefetchScalarGridSpec(
        num_scalar_prefetch=0,
        grid=(num_tiles,),
        in_specs=[
            pl.BlockSpec((d_pad, tb), lambda i: (0, i)),        # x^T batch tile (pipelined DMA)
            pl.BlockSpec((h_pad, d_pad), lambda i: (0, 0)),     # W1 (VMEM-resident)
            pl.BlockSpec((h_pad, 1), lambda i: (0, 0)),         # b1 column
            pl.BlockSpec((h_pad, h_pad), lambda i: (0, 0)),     # W2 (VMEM-resident)
            pl.BlockSpec((h_pad, 1), lambda i: (0, 0)),         # b2 column
            pl.BlockSpec((h_pad, 1), lambda i: (0, 0)),         # W_fc column
            pl.BlockSpec(memory_space=pltpu.MemorySpace.SMEM),  # b_fc scalar
        ],
        out_specs=pl.BlockSpec((1, tb), lambda i: (0, i)),      # lane-dense values
    )

    out = pl.pallas_call(
        value_function_kernel,
        out_shape=jax.ShapeDtypeStruct((1, b_pad), f32),
        grid_spec=grid_spec,
        compiler_params=pltpu.CompilerParams(
            dimension_semantics=("parallel",)),
        cost_estimate=pl.CostEstimate(
            flops=flops, transcendentals=0, bytes_accessed=bytes_accessed),
    )(xT, w1p, b1p, w2p, b2p, wfcp, bfcp)

    # Back to the PyTorch output layout (batch, 1).
    return out[0, :batch].reshape(batch, 1)


def init_params(key, obs_dim, hidden_size):
    """Deterministic synthetic parameters in PyTorch nn.Linear layouts."""
    k1, k2, k3, k4, k5, k6 = jax.random.split(key, 6)
    w1 = jax.random.normal(k1, (hidden_size, obs_dim), jnp.float32) * 0.1
    b1 = jax.random.normal(k2, (hidden_size,), jnp.float32) * 0.1
    w2 = jax.random.normal(k3, (hidden_size, hidden_size), jnp.float32) * 0.1
    b2 = jax.random.normal(k4, (hidden_size,), jnp.float32) * 0.1
    wfc = jax.random.normal(k5, (1, hidden_size), jnp.float32) * 0.1
    bfc = jax.random.normal(k6, (1,), jnp.float32) * 0.1
    return w1, b1, w2, b2, wfc, bfc


def reference_forward(x, params):
    w1, b1, w2, b2, wfc, bfc = params
    h = jnp.maximum(x @ w1.T + b1, 0.0)
    h = jnp.maximum(h @ w2.T + b2, 0.0)
    return h @ wfc.T + bfc


if __name__ == "__main__":
    batch, obs_dim, hidden_size = 8, 32, 32
    key = jax.random.PRNGKey(0)
    kx, kp, kx2 = jax.random.split(key, 3)
    x = jax.random.normal(kx, (batch, obs_dim), jnp.float32)
    params = init_params(kp, obs_dim, hidden_size)

    out = jax.block_until_ready(value_function_forward(x, params))
    ref = reference_forward(x, params)
    assert out.shape == (batch, 1), out.shape
    assert jnp.allclose(out, ref, atol=1e-4, rtol=1e-4), (out, ref)

    # Exercise the batch-tiled grid path (grid > 1, non-multiple batch).
    big_batch = 1032
    xb = jax.random.normal(kx2, (big_batch, obs_dim), jnp.float32)
    out_b = jax.block_until_ready(value_function_forward(xb, params))
    ref_b = reference_forward(xb, params)
    assert out_b.shape == (big_batch, 1), out_b.shape
    assert jnp.allclose(out_b, ref_b, atol=1e-4, rtol=1e-4)

    print("KERNEL_OK")
</pallas_src>

<mosaic_0001>
module attributes {stable_mosaic.version = 11 : i64} {
  func.func @value_function_kernel(%arg0: i32, %arg1: memref<128x8xf32, #tpu.memory_space<vmem>>, %arg2: memref<128x128xf32, #tpu.memory_space<vmem>>, %arg3: memref<128x1xf32, #tpu.memory_space<vmem>>, %arg4: memref<128x128xf32, #tpu.memory_space<vmem>>, %arg5: memref<128x1xf32, #tpu.memory_space<vmem>>, %arg6: memref<128x1xf32, #tpu.memory_space<vmem>>, %arg7: memref<1x1xf32, #tpu.memory_space<smem>>, %arg8: memref<1x8xf32, #tpu.memory_space<vmem>>) attributes {dimension_semantics = [#tpu.dimension_semantics<parallel>], iteration_bounds = array<i64: 1>, scalar_prefetch = 0 : i64, scratch_operands = 0 : i64, tpu.core_type = #tpu.core_type<tc>, window_params = [{transform_indices = @transform_0, window_bounds = array<i64: 128, 8>}, {pipeline_mode = #tpu.pipeline_mode<synchronous>, transform_indices = @transform_1, window_bounds = array<i64: 128, 128>}, {pipeline_mode = #tpu.pipeline_mode<synchronous>, transform_indices = @transform_2, window_bounds = array<i64: 128, 1>}, {pipeline_mode = #tpu.pipeline_mode<synchronous>, transform_indices = @transform_3, window_bounds = array<i64: 128, 128>}, {pipeline_mode = #tpu.pipeline_mode<synchronous>, transform_indices = @transform_4, window_bounds = array<i64: 128, 1>}, {pipeline_mode = #tpu.pipeline_mode<synchronous>, transform_indices = @transform_5, window_bounds = array<i64: 128, 1>}, {transform_indices = @transform_6, window_bounds = array<i64: 1, 1>}, {transform_indices = @transform_7, window_bounds = array<i64: 1, 8>}]} {
    %c0 = arith.constant 0 : index
    %c0_0 = arith.constant 0 : index
    %0 = vector.load %arg2[%c0, %c0_0] : memref<128x128xf32, #tpu.memory_space<vmem>>, vector<128x128xf32>
    %c0_1 = arith.constant 0 : index
    %c0_2 = arith.constant 0 : index
    %1 = vector.load %arg1[%c0_1, %c0_2] : memref<128x8xf32, #tpu.memory_space<vmem>>, vector<128x8xf32>
    %cst = arith.constant dense<0.000000e+00> : vector<128x8xf32>
    %2 = tpu.matmul %0, %1, %cst {dimension_numbers = #tpu.dot_dimension_numbers<[1], [0], [0], [1], [0, 0, 1, 1], [], []>} : vector<128x128xf32>, vector<128x8xf32>, vector<128x8xf32> -> vector<128x8xf32>
    %c0_3 = arith.constant 0 : index
    %c0_4 = arith.constant 0 : index
    %3 = vector.load %arg3[%c0_3, %c0_4] : memref<128x1xf32, #tpu.memory_space<vmem>>, vector<128x1xf32>
    %4 = vector.broadcast %3 : vector<128x1xf32> to vector<128x8xf32>
    %5 = arith.addf %2, %4 : vector<128x8xf32>
    %cst_5 = arith.constant 0.000000e+00 : f32
    %6 = vector.broadcast %cst_5 : f32 to vector<128x8xf32>
    %7 = arith.maximumf %5, %6 : vector<128x8xf32>
    %c0_6 = arith.constant 0 : index
    %c0_7 = arith.constant 0 : index
    %8 = vector.load %arg4[%c0_6, %c0_7] : memref<128x128xf32, #tpu.memory_space<vmem>>, vector<128x128xf32>
    %cst_8 = arith.constant dense<0.000000e+00> : vector<128x8xf32>
    %9 = tpu.matmul %8, %7, %cst_8 {dimension_numbers = #tpu.dot_dimension_numbers<[1], [0], [0], [1], [0, 0, 1, 1], [], []>} : vector<128x128xf32>, vector<128x8xf32>, vector<128x8xf32> -> vector<128x8xf32>
    %c0_9 = arith.constant 0 : index
    %c0_10 = arith.constant 0 : index
    %10 = vector.load %arg5[%c0_9, %c0_10] : memref<128x1xf32, #tpu.memory_space<vmem>>, vector<128x1xf32>
    %11 = vector.broadcast %10 : vector<128x1xf32> to vector<128x8xf32>
    %12 = arith.addf %9, %11 : vector<128x8xf32>
    %cst_11 = arith.constant 0.000000e+00 : f32
    %13 = vector.broadcast %cst_11 : f32 to vector<128x8xf32>
    %14 = arith.maximumf %12, %13 : vector<128x8xf32>
    %c0_12 = arith.constant 0 : index
    %c0_13 = arith.constant 0 : index
    %15 = vector.load %arg6[%c0_12, %c0_13] : memref<128x1xf32, #tpu.memory_space<vmem>>, vector<128x1xf32>
    %16 = vector.broadcast %15 : vector<128x1xf32> to vector<128x8xf32>
    %17 = arith.mulf %14, %16 : vector<128x8xf32>
    %cst_14 = arith.constant dense<0.000000e+00> : vector<8xf32>
    %18 = vector.multi_reduction <add>, %17, %cst_14 [0] : vector<128x8xf32> to vector<8xf32>
    %19 = vector.shape_cast %18 : vector<8xf32> to vector<1x8xf32>
    %c0_15 = arith.constant 0 : index
    %c0_16 = arith.constant 0 : index
    %20 = memref.load %arg7[%c0_15, %c0_16] : memref<1x1xf32, #tpu.memory_space<smem>>
    %21 = vector.broadcast %20 : f32 to vector<1x8xf32>
    %22 = arith.addf %19, %21 : vector<1x8xf32>
    %c0_17 = arith.constant 0 : index
    %c0_18 = arith.constant 0 : index
    %23 = vector.load %arg8[%c0_17, %c0_18] : memref<1x8xf32, #tpu.memory_space<vmem>>, vector<1x8xf32>
    tpu.vector_store %arg8[%c0_17, %c0_18], %22 {strides = array<i32>} : memref<1x8xf32, #tpu.memory_space<vmem>>, vector<1x8xf32>,
    return
  }
  func.func @transform_0(%arg0: i32) -> (i32, i32) {
    %c0_i32 = arith.constant 0 : i32
    %c0_i32_0 = arith.constant 0 : i32
    return %c0_i32, %arg0 : i32, i32
  }
  func.func @transform_1(%arg0: i32) -> (i32, i32) {
    %c0_i32 = arith.constant 0 : i32
    %c0_i32_0 = arith.constant 0 : i32
    %c0_i32_1 = arith.constant 0 : i32
    return %c0_i32, %c0_i32_0 : i32, i32
  }
  func.func @transform_2(%arg0: i32) -> (i32, i32) {
    %c0_i32 = arith.constant 0 : i32
    %c0_i32_0 = arith.constant 0 : i32
    %c0_i32_1 = arith.constant 0 : i32
    return %c0_i32, %c0_i32_0 : i32, i32
  }
  func.func @transform_3(%arg0: i32) -> (i32, i32) {
    %c0_i32 = arith.constant 0 : i32
    %c0_i32_0 = arith.constant 0 : i32
    %c0_i32_1 = arith.constant 0 : i32
    return %c0_i32, %c0_i32_0 : i32, i32
  }
  func.func @transform_4(%arg0: i32) -> (i32, i32) {
    %c0_i32 = arith.constant 0 : i32
    %c0_i32_0 = arith.constant 0 : i32
    %c0_i32_1 = arith.constant 0 : i32
    return %c0_i32, %c0_i32_0 : i32, i32
  }
  func.func @transform_5(%arg0: i32) -> (i32, i32) {
    %c0_i32 = arith.constant 0 : i32
    %c0_i32_0 = arith.constant 0 : i32
    %c0_i32_1 = arith.constant 0 : i32
    return %c0_i32, %c0_i32_0 : i32, i32
  }
  func.func @transform_6(%arg0: i32) -> (i32, i32) {
    %c0_i32 = arith.constant 0 : i32
    %c0_i32_0 = arith.constant 0 : i32
    %c0_i32_1 = arith.constant 0 : i32
    return %c0_i32, %c0_i32_0 : i32, i32
  }
  func.func @transform_7(%arg0: i32) -> (i32, i32) {
    %c0_i32 = arith.constant 0 : i32
    %c0_i32_0 = arith.constant 0 : i32
    return %c0_i32, %arg0 : i32, i32
  }
}

</mosaic_0001>

<bundles_post_ra>
// kernel: tpu_custom_call.1
= control target key start
LH: loop header
LB: loop body
LE: loop exit
PB: predicated region body
PF: predicated region fallthrough
CT: control target
= control target key end

     0   :  { %v664_v3 = vmov 0   ;;  %s1046_s0 = inlined_call_operand.vmem [shape: f32[128,8], index: 0, kind: input, shape index: {}]   ;;  %s1047_s1 = inlined_call_operand.vmem [shape: f32[128,128], index: 1, kind: input, shape index: {}]   ;;  %s1048_s2 = inlined_call_operand.vmem [shape: f32[128,1], index: 2, kind: input, shape index: {}]   ;;  %s1049_s3 = inlined_call_operand.vmem [shape: f32[128,128], index: 3, kind: input, shape index: {}]   ;;  %s1050_s4 = inlined_call_operand.vmem [shape: f32[128,1], index: 4, kind: input, shape index: {}]   ;;  %s1051_s5 = inlined_call_operand.vmem [shape: f32[128,1], index: 5, kind: input, shape index: {}]   ;;  %s1052_s6 = inlined_call_operand.<no memory space> [shape: f32[1,1], index: 6, kind: input, shape index: {}]   ;;  %s1053_s7 = inlined_call_operand.hbm [shape: f32[1,8], index: 7, kind: output, shape index: {}]  }
   0x1   :  { %v59_v0 = vld [vmem:[%s1046_s0 + $0x78] sm:$0xff]  ;;  %v73_v2 = vld [vmem:[%s1048_s2 + $0x68] sm:$0xff]  ;;  %636 = vset.pattern.permute.xlu1 %v664_v3  ;;  %635 = vset.pattern.permute.xlu0 %v664_v3  ;;  %v58_v4 = vld [vmem:[%s1046_s0 + $0x70] sm:$0xff] }
   0x2   :  { %v75_v1 = vld [vmem:[%s1048_s2 + $0x78] sm:$0xff]  ;;  %601 = vmatpush.msra.mxu2 %v59_v0  ;;  %143 = vperm.xlu1 %636, %v73_v2   ;;  %v57_v6 = vld [vmem:[%s1046_s0 + $0x68] sm:$0xff]  ;;  %v56_v7 = vld [vmem:[%s1046_s0 + $0x60] sm:$0xff] }
   0x3   :  { %153 = vperm.xlu0 %635, %v75_v1   ;;  %v71_v5 = vld [vmem:[%s1048_s2 + $0x58] sm:$0xff]  ;;  %156 = vmatpush.msra.mxu0 %v59_v0  ;;  %v74_v9 = vld [vmem:[%s1048_s2 + $0x70] sm:$0xff]  ;;  %v72_v10 = vld [vmem:[%s1048_s2 + $0x60] sm:$0xff] }
   0x4   :  { %602 = vmatpush.msra.mxu2 %v58_v4  ;;  %637 = vset.pattern.permute.xlu2 %v664_v3  ;;  %v55_v8 = vld [vmem:[%s1046_s0 + $0x58] sm:$0xff]  ;;  %v54_v11 = vld [vmem:[%s1046_s0 + $0x50] sm:$0xff]  ;;  %v53_v13 = vld [vmem:[%s1046_s0 + $0x48] sm:$0xff] }
   0x5   :  { %133 = vperm.xlu2 %637, %v71_v5   ;;  %157 = vmatpush.msra.mxu0 %v58_v4  ;;  %v70_v12 = vld [vmem:[%s1048_s2 + $0x50] sm:$0xff] }
   0x6   :  { %603 = vmatpush.msra.mxu2 %v57_v6 }
   0x7   :  { %158 = vmatpush.msra.mxu0 %v57_v6 }
   0x8   :  { %604 = vmatpush.msra.mxu2 %v56_v7 }
   0x9   :  { %159 = vmatpush.msra.mxu0 %v56_v7 }
   0xa   :  { %605 = vmatpush.msra.mxu2 %v55_v8  ;;  %138 = vperm.xlu1 %636, %v72_v10  }
   0xb   :  { %148 = vperm.xlu0 %635, %v74_v9   ;;  %160 = vmatpush.msra.mxu0 %v55_v8 }
   0xc   :  { %606 = vmatpush.msra.mxu2 %v54_v11 }
   0xd   :  { %13 = vsyncpa [#allocation4], 0  ;;  %128 = vperm.xlu2 %637, %v70_v12   ;;  %161 = vmatpush.msra.mxu0 %v54_v11  ;;  %v52_v14 = vld [vmem:[%s1046_s0 + $0x40] sm:$0xff]  ;;  %v51_v15 = vld [vmem:[%s1046_s0 + $0x38] sm:$0xff]  ;;  %vm542_vm0 = vcmask 64512   ;;  %s665_s16 = smov [#allocation3]  }
   0xe   :  { %607 = vmatpush.msra.mxu2 %v53_v13  ;;  %v69_v16 = vld [vmem:[%s1048_s2 + $0x48] sm:$0xff]  ;;  %v68_v17 = vld [vmem:[%s1048_s2 + $0x40] sm:$0xff]  ;;  %v50_v18 = vld [vmem:[%s1046_s0 + $0x30] sm:$0xff]  ;;  %s590_s17 = sshll.u32 %s665_s16, 4  ;;  %vm583_vm1 = vcmask 57344   ;;  %s591_s17 = int_to_ptr.vmem [resolvable:$true] %s590_s17 }
   0xf   :  { %162 = vmatpush.msra.mxu0 %v53_v13  ;;  %v67_v19 = vld [vmem:[%s1048_s2 + $0x38] sm:$0xff]  ;;  %v49_v20 = vld [vmem:[%s1046_s0 + $0x28] sm:$0xff]  ;;  %v48_v21 = vld [vmem:[%s1046_s0 + $0x20] sm:$0xff] }
  0x10   :  { %608 = vmatpush.msra.mxu2 %v52_v14  ;;  %v47_v22 = vld [vmem:[%s1046_s0 + $0x18] sm:$0xff]  ;;  %v66_v23 = vld [vmem:[%s1048_s2 + $0x30] sm:$0xff]  ;;  %v65_v24 = vld [vmem:[%s1048_s2 + $0x28] sm:$0xff] }
  0x11   :  { %163 = vmatpush.msra.mxu0 %v52_v14  ;;  %v46_v25 = vld [vmem:[%s1046_s0 + $0x10] sm:$0xff]  ;;  %v64_v26 = vld [vmem:[%s1048_s2 + $0x20] sm:$0xff]  ;;  %v45_v27 = vld [vmem:[%s1046_s0 + $0x8] sm:$0xff] }
  0x12   :  { %609 = vmatpush.msra.mxu2 %v51_v15  ;;  %118 = vperm.xlu1 %636, %v68_v17   ;;  %v44_v28 = vld [vmem:[%s1046_s0] sm:$0xff]  ;;  %v63_v30 = vld [vmem:[%s1048_s2 + $0x18] sm:$0xff]  ;;  %v62_v32 = vld [vmem:[%s1048_s2 + $0x10] sm:$0xff]  ;;  %s592_s0 = sshll.u32 %s1053_s7, 4  ;;  %s593_s0 = int_to_ptr.hbm [resolvable:$true] %s592_s0 }
  0x13   :  { %123 = vperm.xlu0 %635, %v69_v16   ;;  %164 = vmatpush.msra.mxu0 %v51_v15  ;;  %v36_v29 = vld [vmem:[%s1047_s1 + $0x40] sm:$0xff]  ;;  %v61_v33 = vld [vmem:[%s1048_s2 + $0x8] sm:$0xff]  ;;  %v38_v39 = vld [vmem:[%s1047_s1 + $0x50] sm:$0xff] }
  0x14   :  { %610 = vmatpush.msra.mxu2 %v50_v18  ;;  %v28_v31 = vld [vmem:[%s1047_s1] sm:$0xff]  ;;  %v37_v34 = vld [vmem:[%s1047_s1 + $0x48] sm:$0xff]  ;;  %v255_v40 = vld [vmem:[%s1050_s4 + $0x10] sm:$0xff] }
  0x15   :  { %113 = vperm.xlu2 %637, %v67_v19   ;;  %165 = vmatpush.msra.mxu0 %v50_v18  ;;  %v60_v35 = vld [vmem:[%s1048_s2] sm:$0xff]  ;;  %v29_v36 = vld [vmem:[%s1047_s1 + $0x8] sm:$0xff]  ;;  %v30_v41 = vld [vmem:[%s1047_s1 + $0x10] sm:$0xff] }
  0x16   :  { %611 = vmatpush.msra.mxu2 %v49_v20  ;;  %v253_v37 = vld [vmem:[%s1050_s4] sm:$0xff]  ;;  %v254_v38 = vld [vmem:[%s1050_s4 + $0x8] sm:$0xff]  ;;  %v256_v42 = vld [vmem:[%s1050_s4 + $0x18] sm:$0xff] }
  0x17   :  { %166 = vmatpush.msra.mxu0 %v49_v20  ;;  %v257_v43 = vld [vmem:[%s1050_s4 + $0x20] sm:$0xff]  ;;  %v39_v44 = vld [vmem:[%s1047_s1 + $0x58] sm:$0xff]  ;;  %v258_v45 = vld [vmem:[%s1050_s4 + $0x28] sm:$0xff] }
  0x18   :  { %612 = vmatpush.msra.mxu2 %v48_v21  ;;  %v31_v46 = vld [vmem:[%s1047_s1 + $0x18] sm:$0xff]  ;;  %v259_v47 = vld [vmem:[%s1050_s4 + $0x30] sm:$0xff]  ;;  %v40_v49 = vld [vmem:[%s1047_s1 + $0x60] sm:$0xff] }
  0x19   :  { %167 = vmatpush.msra.mxu0 %v48_v21  ;;  %v260_v48 = vld [vmem:[%s1050_s4 + $0x38] sm:$0xff]  ;;  %v261_v50 = vld [vmem:[%s1050_s4 + $0x40] sm:$0xff]  ;;  %v262_v52 = vld [vmem:[%s1050_s4 + $0x48] sm:$0xff] }
  0x1a   :  { %613 = vmatpush.msra.mxu2 %v47_v22  ;;  %103 = vperm.xlu1 %636, %v65_v24   ;;  %v32_v51 = vld [vmem:[%s1047_s1 + $0x20] sm:$0xff]  ;;  %v263_v53 = vld [vmem:[%s1050_s4 + $0x50] sm:$0xff]  ;;  %v41_v54 = vld [vmem:[%s1047_s1 + $0x68] sm:$0xff] }
  0x1b   :  { %108 = vperm.xlu0 %635, %v66_v23   ;;  %168 = vmatpush.msra.mxu0 %v47_v22  ;;  %v264_v55 = vld [vmem:[%s1050_s4 + $0x58] sm:$0xff]  ;;  %v33_v56 = vld [vmem:[%s1047_s1 + $0x28] sm:$0xff]  ;;  %v265_v57 = vld [vmem:[%s1050_s4 + $0x60] sm:$0xff] }
  0x1c   :  { %614 = vmatpush.msra.mxu2 %v46_v25  ;;  %v266_v58 = vld [vmem:[%s1050_s4 + $0x68] sm:$0xff]  ;;  %v42_v59 = vld [vmem:[%s1047_s1 + $0x70] sm:$0xff]  ;;  %v268_v62 = vld [vmem:[%s1050_s4 + $0x78] sm:$0xff] }
  0x1d   :  { %98 = vperm.xlu2 %637, %v64_v26   ;;  %169 = vmatpush.msra.mxu0 %v46_v25  ;;  %v267_v60 = vld [vmem:[%s1050_s4 + $0x70] sm:$0xff]  ;;  %v430_v63 = vld [vmem:[%s1051_s5] sm:$0xff]  ;;  %v43_v0 = vld [vmem:[%s1047_s1 + $0x78] sm:$0xff] }
  0x1e   :  { %615 = vmatpush.msra.mxu2 %v45_v27  ;;  %v34_v61 = vld [vmem:[%s1047_s1 + $0x30] sm:$0xff]  ;;  %v431_v1 = vld [vmem:[%s1051_s5 + $0x8] sm:$0xff]  ;;  %v35_v2 = vld [vmem:[%s1047_s1 + $0x38] sm:$0xff] }
  0x1f   :  { %170 = vmatpush.msra.mxu0 %v45_v27  ;;  %v432_v3 = vld [vmem:[%s1051_s5 + $0x10] sm:$0xff]  ;;  %v433_v4 = vld [vmem:[%s1051_s5 + $0x18] sm:$0xff]  ;;  %v434_v5 = vld [vmem:[%s1051_s5 + $0x20] sm:$0xff] }
  0x20   :  { %616 = vmatpush.msra.mxu2 %v44_v28  ;;  %v435_v6 = vld [vmem:[%s1051_s5 + $0x28] sm:$0xff]  ;;  %v436_v7 = vld [vmem:[%s1051_s5 + $0x30] sm:$0xff]  ;;  %v437_v8 = vld [vmem:[%s1051_s5 + $0x38] sm:$0xff] }
  0x21   :  { %196 = vmatmul.f32.vlgmr.msra.gmra.mxu2 %v36_v29  ;;  %171 = vmatpush.msra.mxu0 %v44_v28  ;;  %v438_v9 = vld [vmem:[%s1051_s5 + $0x40] sm:$0xff]  ;;  %v439_v10 = vld [vmem:[%s1051_s5 + $0x48] sm:$0xff]  ;;  %v440_v11 = vld [vmem:[%s1051_s5 + $0x50] sm:$0xff] }
  0x22   :  { %172 = vmatmul.f32.vlgmr.msra.gmra.mxu0 %v28_v31  ;;  %88 = vperm.xlu1 %636, %v62_v32   ;;  %v441_v12 = vld [vmem:[%s1051_s5 + $0x58] sm:$0xff]  ;;  %v442_v13 = vld [vmem:[%s1051_s5 + $0x60] sm:$0xff]  ;;  %v443_v14 = vld [vmem:[%s1051_s5 + $0x68] sm:$0xff] }
  0x23   :  { %93 = vperm.xlu0 %635, %v63_v30   ;;  %v444_v15 = vld [vmem:[%s1051_s5 + $0x70] sm:$0xff]  ;;  %v445_v16 = vld [vmem:[%s1051_s5 + $0x78] sm:$0xff] }
  0x25   :  { %83 = vperm.xlu2 %637, %v61_v33  }
  0x29   :  { %199 = vmatmul.f32.gmra.mxu2 %v37_v34 }
  0x2a   :  { %175 = vmatmul.f32.gmra.mxu0 %v29_v36  ;;  %271 = vperm.xlu1 %636, %v253_v37  }
  0x2b   :  { %78 = vperm.xlu0 %635, %v60_v35  }
  0x2d   :  { %276 = vperm.xlu2 %637, %v254_v38  }
  0x31   :  { %202 = vmatmul.f32.gmra.mxu2 %v38_v39 }
  0x32   :  { %178 = vmatmul.f32.gmra.mxu0 %v30_v41  ;;  %286 = vperm.xlu1 %636, %v256_v42  }
  0x33   :  { %281 = vperm.xlu0 %635, %v255_v40  }
  0x35   :  { %291 = vperm.xlu2 %637, %v257_v43  }
  0x39   :  { %205 = vmatmul.f32.gmra.mxu2 %v39_v44 }
  0x3a   :  { %181 = vmatmul.f32.gmra.mxu0 %v31_v46  ;;  %301 = vperm.xlu1 %636, %v259_v47  }
  0x3b   :  { %296 = vperm.xlu0 %635, %v258_v45  }
  0x3d   :  { %306 = vperm.xlu2 %637, %v260_v48  }
  0x41   :  { %208 = vmatmul.f32.gmra.mxu2 %v40_v49 }
  0x42   :  { %184 = vmatmul.f32.gmra.mxu0 %v32_v51  ;;  %316 = vperm.xlu1 %636, %v262_v52  }
  0x43   :  { %311 = vperm.xlu0 %635, %v261_v50  }
  0x45   :  { %321 = vperm.xlu2 %637, %v263_v53  }
  0x49   :  { %211 = vmatmul.f32.gmra.mxu2 %v41_v54 }
  0x4a   :  { %187 = vmatmul.f32.gmra.mxu0 %v33_v56  ;;  %331 = vperm.xlu1 %636, %v265_v57  }
  0x4b   :  { %326 = vperm.xlu0 %635, %v264_v55  }
  0x4d   :  { %336 = vperm.xlu2 %637, %v266_v58  }
  0x51   :  { %214 = vmatmul.f32.gmra.mxu2 %v42_v59 }
  0x52   :  { %190 = vmatmul.f32.gmra.mxu0 %v34_v61  ;;  %346 = vperm.xlu1 %636, %v268_v62  }
  0x53   :  { %341 = vperm.xlu0 %635, %v267_v60  }
  0x55   :  { %448 = vperm.xlu2 %637, %v430_v63  }
  0x59   :  { %217 = vmatmul.f32.gmra.mxu2 %v43_v0 }
  0x5a   :  { %193 = vmatmul.f32.gmra.mxu0 %v35_v2  ;;  %458 = vperm.xlu1 %636, %v432_v3  }
  0x5b   :  { %453 = vperm.xlu0 %635, %v431_v1  }
  0x5d   :  { %463 = vperm.xlu2 %637, %v433_v4  }
  0x5f   :  { %v134_v30 = vpop.permute.xlu2 %133 }
  0x62   :  { %473 = vperm.xlu1 %636, %v435_v6  }
  0x63   :  { %468 = vperm.xlu0 %635, %v434_v5  }
  0x65   :  { %478 = vperm.xlu2 %637, %v436_v7  }
  0x67   :  { %v129_v35 = vpop.permute.xlu2 %128 }
  0x6a   :  { %488 = vperm.xlu1 %636, %v438_v9  }
  0x6b   :  { %483 = vperm.xlu0 %635, %v437_v8  }
  0x6d   :  { %493 = vperm.xlu2 %637, %v439_v10  }
  0x6f   :  { %v114_v46 = vpop.permute.xlu2 %113 }
  0x72   :  { %503 = vperm.xlu1 %636, %v441_v12  }
  0x73   :  { %498 = vperm.xlu0 %635, %v440_v11  }
  0x74   :  { %v144_v28 = vpop.permute.xlu1 %143 }
  0x75   :  { %508 = vperm.xlu2 %637, %v442_v13   ;;  %v154_v26 = vpop.permute.xlu0 %153 }
  0x77   :  { %v99_v60 = vpop.permute.xlu2 %98 }
  0x7a   :  { %518 = vperm.xlu1 %636, %v444_v15  }
  0x7b   :  { %513 = vperm.xlu0 %635, %v443_v14  }
  0x7c   :  { %v139_v34 = vpop.permute.xlu1 %138 }
  0x7d   :  { %523 = vperm.xlu2 %637, %v445_v16   ;;  %v149_v31 = vpop.permute.xlu0 %148 }
  0x7f   :  { %v84_v9 = vpop.permute.xlu2 %83 }
  0x84   :  { %v119_v43 = vpop.permute.xlu1 %118 }
  0x85   :  { %v124_v36 = vpop.permute.xlu0 %123 }
  0x8c   :  { %v104_v57 = vpop.permute.xlu1 %103 }
  0x8d   :  { %v109_v49 = vpop.permute.xlu0 %108 }
  0x94   :  { %v89_v6 = vpop.permute.xlu1 %88 }
  0x95   :  { %v94_v63 = vpop.permute.xlu0 %93 }
  0x9d   :  { %v79_v12 = vpop.permute.xlu0 %78 }
  0x9f   :  { %v946_v17 = vpop.f32.mrf.mxu0 }
  0xa0   :  { %v174_v13 = vadd.f32 %v946_v17, %v79_v12  ;;  %v238_v17 = vld [vmem:[%s1049_s3 + $0x8] sm:$0xff] }
  0xa2   :  { %v221_v16 = vmax.f32 %v174_v13, 0.0 }
  0xa4   :  { %v197_v18 = vpop.f32.mrf.mxu2 }
  0xa5   :  { %v198_v55 = vadd.f32 %v197_v18, %v119_v43  ;;  %v237_v18 = vld [vmem:[%s1049_s3] sm:$0xff] }
  0xa7   :  { %v948_v19 = vpop.f32.mrf.mxu0  ;;  %v229_v61 = vmax.f32 %v198_v55, 0.0 }
  0xa8   :  { %v177_v10 = vadd.f32 %v948_v19, %v84_v9  ;;  %v245_v19 = vld [vmem:[%s1049_s3 + $0x40] sm:$0xff] }
  0xaa   :  { %v222_v15 = vmax.f32 %v177_v10, 0.0 }
  0xac   :  { %v200_v20 = vpop.f32.mrf.mxu2 }
  0xad   :  { %v201_v52 = vadd.f32 %v200_v20, %v124_v36  ;;  %v246_v20 = vld [vmem:[%s1049_s3 + $0x48] sm:$0xff] }
  0xaf   :  { %v950_v22 = vpop.f32.mrf.mxu0  ;;  %v230_v58 = vmax.f32 %v201_v52, 0.0 }
  0xb0   :  { %v180_v7 = vadd.f32 %v950_v22, %v89_v6  ;;  %v247_v22 = vld [vmem:[%s1049_s3 + $0x50] sm:$0xff] }
  0xb2   :  { %v223_v14 = vmax.f32 %v180_v7, 0.0 }
  0xb4   :  { %v203_v21 = vpop.f32.mrf.mxu2 }
  0xb5   :  { %v204_v50 = vadd.f32 %v203_v21, %v129_v35  ;;  %v239_v21 = vld [vmem:[%s1049_s3 + $0x10] sm:$0xff]  ;;  %v282_v35 = vpop.permute.xlu0 %281 }
  0xb7   :  { %v182_v24 = vpop.f32.mrf.mxu0  ;;  %v231_v56 = vmax.f32 %v204_v50, 0.0 }
  0xb8   :  { %v183_v4 = vadd.f32 %v182_v24, %v94_v63  ;;  %v248_v24 = vld [vmem:[%s1049_s3 + $0x58] sm:$0xff] }
  0xba   :  { %v224_v11 = vmax.f32 %v183_v4, 0.0 }
  0xbc   :  { %v206_v23 = vpop.f32.mrf.mxu2 }
  0xbd   :  { %v207_v47 = vadd.f32 %v206_v23, %v134_v30  ;;  %v240_v23 = vld [vmem:[%s1049_s3 + $0x18] sm:$0xff]  ;;  %v251_v30 = vld [vmem:[%s1049_s3 + $0x70] sm:$0xff] }
  0xbf   :  { %v185_v27 = vpop.f32.mrf.mxu0  ;;  %v232_v53 = vmax.f32 %v207_v47, 0.0 }
  0xc0   :  { %v186_v2 = vadd.f32 %v185_v27, %v99_v60  ;;  %v242_v27 = vld [vmem:[%s1049_s3 + $0x28] sm:$0xff] }
  0xc2   :  { %v225_v8 = vmax.f32 %v186_v2, 0.0 }
  0xc4   :  { %v209_v25 = vpop.f32.mrf.mxu2 }
  0xc5   :  { %v210_v44 = vadd.f32 %v209_v25, %v139_v34  ;;  %v241_v25 = vld [vmem:[%s1049_s3 + $0x20] sm:$0xff]  ;;  %v277_v34 = vpop.permute.xlu2 %276 }
  0xc7   :  { %v188_v32 = vpop.f32.mrf.mxu0  ;;  %v233_v51 = vmax.f32 %v210_v44, 0.0 }
  0xc8   :  { %v189_v0 = vadd.f32 %v188_v32, %v104_v57  ;;  %v252_v32 = vld [vmem:[%s1049_s3 + $0x78] sm:$0xff] }
  0xca   :  { %v226_v5 = vmax.f32 %v189_v0, 0.0 }
  0xcc   :  { %v212_v29 = vpop.f32.mrf.mxu2 }
  0xcd   :  { %v213_v41 = vadd.f32 %v212_v29, %v144_v28  ;;  %v250_v28 = vld [vmem:[%s1049_s3 + $0x68] sm:$0xff]  ;;  %v243_v29 = vld [vmem:[%s1049_s3 + $0x30] sm:$0xff] }
  0xcf   :  { %v191_v40 = vpop.f32.mrf.mxu0  ;;  %v234_v48 = vmax.f32 %v213_v41, 0.0 }
  0xd0   :  { %v192_v62 = vadd.f32 %v191_v40, %v109_v49 }
  0xd2   :  { %v227_v3 = vmax.f32 %v192_v62, 0.0 }
  0xd4   :  { %v215_v33 = vpop.f32.mrf.mxu2 }
  0xd5   :  { %v216_v38 = vadd.f32 %v215_v33, %v149_v31  ;;  %v244_v31 = vld [vmem:[%s1049_s3 + $0x38] sm:$0xff]  ;;  %v272_v33 = vpop.permute.xlu1 %271 }
  0xd7   :  { %v235_v45 = vmax.f32 %v216_v38, 0.0  ;;  %v194_v54 = vpop.f32.mrf.mxu0  ;;  %v297_v38 = vpop.permute.xlu0 %296 }
  0xd8   :  { %v195_v59 = vadd.f32 %v194_v54, %v114_v46 }
  0xda   :  { %v228_v1 = vmax.f32 %v195_v59, 0.0 }
  0xdc   :  { %v218_v37 = vpop.f32.mrf.mxu2 }
  0xdd   :  { %v219_v39 = vadd.f32 %v218_v37, %v154_v26  ;;  %v249_v26 = vld [vmem:[%s1049_s3 + $0x60] sm:$0xff]  ;;  %v287_v36 = vpop.permute.xlu1 %286  ;;  %v292_v37 = vpop.permute.xlu2 %291 }
  0xdf   :  { %v236_v42 = vmax.f32 %v219_v39, 0.0  ;;  %v312_v41 = vpop.permute.xlu0 %311 }
  0xe1   :  { %349 = vmatpush.msra.mxu1 %v236_v42  ;;  %617 = vmatpush.msra.mxu3 %v236_v42 }
  0xe3   :  { %350 = vmatpush.msra.mxu1 %v235_v45  ;;  %618 = vmatpush.msra.mxu3 %v235_v45 }
  0xe5   :  { %351 = vmatpush.msra.mxu1 %v234_v48  ;;  %619 = vmatpush.msra.mxu3 %v234_v48  ;;  %v302_v39 = vpop.permute.xlu1 %301  ;;  %v1003_v40 = vpop.permute.xlu2 %306 }
  0xe7   :  { %352 = vmatpush.msra.mxu1 %v233_v51  ;;  %620 = vmatpush.msra.mxu3 %v233_v51  ;;  %v1007_v47 = vpop.permute.xlu0 %326 }
  0xe9   :  { %353 = vmatpush.msra.mxu1 %v232_v53  ;;  %621 = vmatpush.msra.mxu3 %v232_v53 }
  0xeb   :  { %354 = vmatpush.msra.mxu1 %v231_v56  ;;  %622 = vmatpush.msra.mxu3 %v231_v56 }
  0xed   :  { %355 = vmatpush.msra.mxu1 %v230_v58  ;;  %623 = vmatpush.msra.mxu3 %v230_v58  ;;  %v317_v43 = vpop.permute.xlu1 %316  ;;  %v1005_v44 = vpop.permute.xlu2 %321 }
  0xef   :  { %356 = vmatpush.msra.mxu1 %v229_v61  ;;  %624 = vmatpush.msra.mxu3 %v229_v61  ;;  %v1013_v52 = vpop.permute.xlu0 %341 }
  0xf1   :  { %357 = vmatpush.msra.mxu1 %v228_v1  ;;  %625 = vmatpush.msra.mxu3 %v228_v1 }
  0xf3   :  { %358 = vmatpush.msra.mxu1 %v227_v3  ;;  %626 = vmatpush.msra.mxu3 %v227_v3 }
  0xf5   :  { %359 = vmatpush.msra.mxu1 %v226_v5  ;;  %627 = vmatpush.msra.mxu3 %v226_v5  ;;  %v1009_v48 = vpop.permute.xlu1 %331  ;;  %v1011_v49 = vpop.permute.xlu2 %336 }
  0xf7   :  { %360 = vmatpush.msra.mxu1 %v225_v8  ;;  %628 = vmatpush.msra.mxu3 %v225_v8  ;;  %v454_v57 = vpop.permute.xlu0 %453 }
  0xf9   :  { %361 = vmatpush.msra.mxu1 %v224_v11  ;;  %629 = vmatpush.msra.mxu3 %v224_v11 }
  0xfb   :  { %362 = vmatpush.msra.mxu1 %v223_v14  ;;  %630 = vmatpush.msra.mxu3 %v223_v14 }
  0xfd   :  { %363 = vmatpush.msra.mxu1 %v222_v15  ;;  %631 = vmatpush.msra.mxu3 %v222_v15  ;;  %v1015_v53 = vpop.permute.xlu1 %346  ;;  %v449_v55 = vpop.permute.xlu2 %448 }
  0xff   :  { %364 = vmatpush.msra.mxu1 %v221_v16  ;;  %632 = vmatpush.msra.mxu3 %v221_v16  ;;  %v469_v2 = vpop.permute.xlu0 %468 }
 0x100   :  { %365 = vmatmul.f32.vlgmr.msra.gmra.mxu1 %v237_v18  ;;  %389 = vmatmul.f32.vlgmr.msra.gmra.mxu3 %v245_v19 }
 0x105   :  { %v459_v59 = vpop.permute.xlu1 %458  ;;  %v464_v61 = vpop.permute.xlu2 %463 }
 0x108   :  { %368 = vmatmul.f32.gmra.mxu1 %v238_v17  ;;  %392 = vmatmul.f32.gmra.mxu3 %v246_v20 }
 0x10d   :  { %v474_v6 = vpop.permute.xlu1 %473  ;;  %v479_v10 = vpop.permute.xlu2 %478 }
 0x110   :  { %371 = vmatmul.f32.gmra.mxu1 %v239_v21  ;;  %395 = vmatmul.f32.gmra.mxu3 %v247_v22 }
 0x118   :  { %374 = vmatmul.f32.gmra.mxu1 %v240_v23  ;;  %398 = vmatmul.f32.gmra.mxu3 %v248_v24  ;;  %v484_v23 = vpop.permute.xlu0 %483 }
 0x120   :  { %377 = vmatmul.f32.gmra.mxu1 %v241_v25  ;;  %401 = vmatmul.f32.gmra.mxu3 %v249_v26 }
 0x128   :  { %380 = vmatmul.f32.gmra.mxu1 %v242_v27  ;;  %404 = vmatmul.f32.gmra.mxu3 %v250_v28  ;;  %v489_v28 = vpop.permute.xlu1 %488 }
 0x130   :  { %383 = vmatmul.f32.gmra.mxu1 %v243_v29  ;;  %407 = vmatmul.f32.gmra.mxu3 %v251_v30 }
 0x138   :  { %386 = vmatmul.f32.gmra.mxu1 %v244_v31  ;;  %410 = vmatmul.f32.gmra.mxu3 %v252_v32 }
 0x17d   :  { %v366_v42 = vpop.f32.mrf.mxu1 }
 0x17e   :  { %v367_v0 = vadd.f32 %v366_v42, %v272_v33  ;;  %v494_v33 = vpop.permute.xlu2 %493 }
 0x180   :  { %v414_v7 = vmax.f32 %v367_v0, 0.0 }
 0x182   :  { %v526_v15 = vmul.f32 %v449_v55, %v414_v7 }
 0x183   :  { %v390_v45 = vpop.f32.mrf.mxu3 }
 0x184   :  { %v543_v24 = vsel %vm542_vm0, %v526_v15, 0.0  ;;  %v391_v30 = vadd.f32 %v390_v45, %v312_v41 }
 0x185   :  { %v369_v46 = vpop.f32.mrf.mxu1 }
 0x186   :  { %v370_v62 = vadd.f32 %v369_v46, %v277_v34  ;;  %v422_v46 = vmax.f32 %v391_v30, 0.0 }
 0x188   :  { %v415_v4 = vmax.f32 %v370_v62, 0.0 }
 0x18a   :  { %v527_v11 = vmul.f32 %v454_v57, %v415_v4 }
 0x18b   :  { %v393_v50 = vpop.f32.mrf.mxu3 }
 0x18c   :  { %v544_v17 = vsel %vm542_vm0, %v527_v11, 0.0 }
 0x18d   :  { %v372_v51 = vpop.f32.mrf.mxu1  ;;  %v545_v29 = vadd.f32 %v544_v17, %v543_v24 }
 0x18e   :  { %v373_v1 = vadd.f32 %v372_v51, %v282_v35 }
 0x190   :  { %v416_v8 = vmax.f32 %v373_v1, 0.0 }
 0x192   :  { %v528_v16 = vmul.f32 %v459_v59, %v416_v8 }
 0x193   :  { %v396_v54 = vpop.f32.mrf.mxu3 }
 0x194   :  { %v546_v25 = vsel %vm542_vm0, %v528_v16, 0.0  ;;  %v397_v51 = vadd.f32 %v396_v54, %v1005_v44 }
 0x195   :  { %v375_v56 = vpop.f32.mrf.mxu1  ;;  %v547_v34 = vadd.f32 %v546_v25, %v545_v29 }
 0x196   :  { %v376_v5 = vadd.f32 %v375_v56, %v287_v36  ;;  %v394_v36 = vadd.f32 %v393_v50, %v317_v43  ;;  %v499_v43 = vpop.permute.xlu0 %498  ;;  %v424_v62 = vmax.f32 %v397_v51, 0.0 }
 0x198   :  { %v417_v12 = vmax.f32 %v376_v5, 0.0  ;;  %v423_v45 = vmax.f32 %v394_v36, 0.0  ;;  %v509_v5 = vpop.permute.xlu2 %508  ;;  %v536_v7 = vmul.f32 %v499_v43, %v424_v62 }
 0x19a   :  { %v529_v20 = vmul.f32 %v464_v61, %v417_v12  ;;  %v534_v61 = vmul.f32 %v489_v28, %v422_v46  ;;  %v535_v54 = vmul.f32 %v494_v33, %v423_v45 }
 0x19b   :  { %v399_v58 = vpop.f32.mrf.mxu3 }
 0x19c   :  { %v548_v31 = vsel %vm542_vm0, %v529_v20, 0.0  ;;  %v400_v57 = vadd.f32 %v399_v58, %v1007_v47 }
 0x19d   :  { %v378_v60 = vpop.f32.mrf.mxu1 }
 0x19e   :  { %v379_v9 = vadd.f32 %v378_v60, %v292_v37  ;;  %v514_v16 = vpop.permute.xlu0 %513 }
 0x1a0   :  { %v418_v18 = vmax.f32 %v379_v9, 0.0  ;;  %v524_v24 = vpop.permute.xlu2 %523 }
 0x1a2   :  { %v530_v26 = vmul.f32 %v469_v2, %v418_v18  ;;  %v504_v2 = vpop.permute.xlu1 %503 }
 0x1a3   :  { %v402_v63 = vpop.f32.mrf.mxu3 }
 0x1a4   :  { %v550_v37 = vsel %vm542_vm0, %v530_v26, 0.0  ;;  %v403_v0 = vadd.f32 %v402_v63, %v1009_v48  ;;  %v560_v48 = vsel %vm542_vm0, %v535_v54, 0.0 }
 0x1a5   :  { %v381_v3 = vpop.f32.mrf.mxu1 }
 0x1a6   :  { %v382_v13 = vadd.f32 %v381_v3, %v297_v38  ;;  %v425_v3 = vmax.f32 %v400_v57, 0.0  ;;  %v426_v8 = vmax.f32 %v403_v0, 0.0 }
 0x1a8   :  { %v419_v21 = vmax.f32 %v382_v13, 0.0  ;;  %v537_v63 = vmul.f32 %v504_v2, %v425_v3 }
 0x1aa   :  { %v531_v32 = vmul.f32 %v474_v6, %v419_v21  ;;  %v558_v6 = vsel %vm542_vm0, %v534_v61, 0.0  ;;  %v519_v21 = vpop.permute.xlu1 %518 }
 0x1ab   :  { %v405_v14 = vpop.f32.mrf.mxu3 }
 0x1ac   :  { %v552_v55 = vsel %vm542_vm0, %v531_v32, 0.0 }
 0x1ad   :  { %v384_v19 = vpop.f32.mrf.mxu1 }
 0x1ae   :  { %v385_v22 = vadd.f32 %v384_v19, %v302_v39  ;;  %v549_v39 = vadd.f32 %v548_v31, %v547_v34  ;;  %v564_v19 = vsel %vm542_vm0, %v537_v63, 0.0 }
 0x1b0   :  { %v420_v27 = vmax.f32 %v385_v22, 0.0  ;;  %v551_v41 = vadd.f32 %v550_v37, %v549_v39  ;;  %v581_v37 = vstv %s1052_s6 }
 0x1b2   :  { %v532_v38 = vmul.f32 %v479_v10, %v420_v27  ;;  %v553_v50 = vadd.f32 %v552_v55, %v551_v41 }
 0x1b3   :  { %v408_v35 = vpop.f32.mrf.mxu3 }
 0x1b4   :  { %v554_v59 = vsel %vm542_vm0, %v532_v38, 0.0  ;;  %v409_v9 = vadd.f32 %v408_v35, %v1013_v52 }
 0x1b5   :  { %v387_v42 = vpop.f32.mrf.mxu1  ;;  %v555_v44 = vadd.f32 %v554_v59, %v553_v50 }
 0x1b6   :  { %v388_v56 = vadd.f32 %v387_v42, %v1003_v40  ;;  %v406_v40 = vadd.f32 %v405_v14, %v1011_v49  ;;  %v562_v49 = vsel %vm542_vm0, %v536_v7, 0.0  ;;  %v538_v14 = vmul.f32 %v509_v5, %v426_v8 }
 0x1b7   :  { %v428_v15 = vmax.f32 %v409_v9, 0.0 }
 0x1b8   :  { %v421_v60 = vmax.f32 %v388_v56, 0.0  ;;  %v427_v11 = vmax.f32 %v406_v40, 0.0  ;;  %v566_v22 = vsel %vm542_vm0, %v538_v14, 0.0 }
 0x1ba   :  { %v533_v1 = vmul.f32 %v484_v23, %v421_v60  ;;  %v539_v17 = vmul.f32 %v514_v16, %v427_v11  ;;  %v540_v23 = vmul.f32 %v519_v21, %v428_v15 }
 0x1bb   :  { %v411_v58 = vpop.f32.mrf.mxu3 }
 0x1bc   :  { %v556_v4 = vsel %vm542_vm0, %v533_v1, 0.0  ;;  %v412_v12 = vadd.f32 %v411_v58, %v1015_v53  ;;  %v568_v53 = vsel %vm542_vm0, %v539_v17, 0.0  ;;  %v570_v28 = vsel %vm542_vm0, %v540_v23, 0.0 }
 0x1bd   :  { %v557_v47 = vadd.f32 %v556_v4, %v555_v44 }
 0x1be   :  { %v429_v20 = vmax.f32 %v412_v12, 0.0 }
 0x1bf   :  { %v559_v10 = vadd.f32 %v558_v6, %v557_v47 }
 0x1c0   :  { %v541_v26 = vmul.f32 %v524_v24, %v429_v20 }
 0x1c1   :  { %v561_v13 = vadd.f32 %v560_v48, %v559_v10 }
 0x1c2   :  { %v572_v30 = vsel %vm542_vm0, %v541_v26, 0.0 }
 0x1c3   :  { %v563_v18 = vadd.f32 %v562_v49, %v561_v13 }
 0x1c5   :  { %v565_v52 = vadd.f32 %v564_v19, %v563_v18 }
 0x1c7   :  { %v567_v25 = vadd.f32 %v566_v22, %v565_v52 }
 0x1c9   :  { %v569_v27 = vadd.f32 %v568_v53, %v567_v25 }
 0x1cb   :  { %v571_v29 = vadd.f32 %v570_v28, %v569_v27 }
 0x1cd   :  { %v573_v31 = vadd.f32 %v572_v30, %v571_v29 }
 0x1cf   :  { %v574_v32 = vrot.slane %v573_v31, 4 }
 0x1d1   :  { %v575_v33 = vadd.f32 %v574_v32, %v573_v31 }
 0x1d3   :  { %v576_v34 = vrot.slane %v575_v33, 2 }
 0x1d5   :  { %v577_v35 = vadd.f32 %v576_v34, %v575_v33 }
 0x1d7   :  { %v578_v36 = vrot.slane %v577_v35, 1 }
 0x1d9   :  { %v579_v38 = vadd.f32 %v578_v36, %v577_v35 }
 0x1db   :  { %v582_v39 = vadd.f32 %v581_v37, %v579_v38 }
 0x1dd   :  { %584 = vst.msk [vmem:[#allocation3] sm:$0x1] %vm583_vm1, %v582_v39 }
 0x1de   :  { %595 = dma.vmem_to_hbm [thread:$0]  %s591_s17, 16, %s593_s0, [#allocation4]  }
 0x1df   :  { %662 = dma.done.wait [#allocation4], 16  }
 0x1e0   :  { %663 = vsyncadd [#allocation4], 4294967280 }
 0x1e1   :  { %600 = vsyncpa [#allocation4], 1 }

</bundles_post_ra>
